<compile_context>
chip_gen: v5e
topology: v5e:2x2
jax: 0.10.0
libtpu: 0.0.40
codegen_flags: <defaults>
</compile_context>

<pallas_src>
import functools

import jax
import jax.numpy as jnp
from jax.experimental import pallas as pl
from jax.experimental.pallas import tpu as pltpu


def _rnn_linear_kernel(x_ref, wih0_ref, wihr_ref, whh_ref, bsum_ref,
                       wlin_ref, blin_ref, out_ref,
                       *, n_layer, seq_len, nonlinearity):
    """Full RNN recurrence + final Linear, computed on values in vregs.

    x_ref:    (seq_len, n_input)
    wih0_ref: (n_input, hidden)            layer-0 W_ih (pre-transposed)
    wihr_ref: (max(n_layer-1,1), hidden, hidden)  layers 1.. W_ih (pre-transposed)
    whh_ref:  (n_layer, hidden, hidden)    W_hh per layer (pre-transposed)
    bsum_ref: (n_layer, hidden)            precomputed (b_ih + b_hh) per layer
    wlin_ref: (hidden, n_output)
    blin_ref: (1, n_output)
    out_ref:  (1, n_output)
    """
    hidden = whh_ref.shape[-1]

    if nonlinearity == "tanh":
        act = jnp.tanh
    else:  # 'relu'
        act = lambda v: jnp.maximum(v, 0.0)

    inp = x_ref[...]                                   # (seq_len, n_input)
    h = jnp.zeros((1, hidden), jnp.float32)

    for layer in range(n_layer):
        wih = wih0_ref[...] if layer == 0 else wihr_ref[layer - 1]
        whh = whh_ref[layer]                           # stays resident across steps
        bsum = bsum_ref[layer:layer + 1, :]            # (1, hidden)

        # Hoisted input projection: one M=seq_len matmul, biases folded in.
        pre = jnp.dot(inp, wih, preferred_element_type=jnp.float32) + bsum

        last_layer = (layer == n_layer - 1)
        h = jnp.zeros((1, hidden), jnp.float32)        # per-layer zero init (torch default)
        outs = []
        # Fully unrolled serial recurrence; per step only h @ W_hh + pre[t] -> act.
        for t in range(seq_len):
            h = act(pre[t:t + 1, :]
                    + jnp.dot(h, whh, preferred_element_type=jnp.float32))
            if not last_layer:
                outs.append(h)

        if not last_layer:
            # Register-resident handoff to the next layer (no VMEM scratch).
            inp = jnp.concatenate(outs, axis=0)        # (seq_len, hidden)

    # Final Linear; PyTorch's `[-1]` picks the last timestep row.
    out_ref[...] = (jnp.dot(h, wlin_ref[...],
                            preferred_element_type=jnp.float32)
                    + blin_ref[...])


def custom_model_forward(x, params, *, n_layer, nonlinearity="tanh"):
    """Pallas equivalent of _CustomModel.forward (n_output must be 1)."""
    wih0, wihr, whh, bih, bhh, wlin, blin = params
    seq_len = x.shape[0]
    n_output = wlin.shape[-1]

    # Fold the two RNN biases together once, outside the kernel.
    bsum = (bih + bhh).astype(jnp.float32)

    kernel = functools.partial(_rnn_linear_kernel, n_layer=n_layer,
                               seq_len=seq_len, nonlinearity=nonlinearity)
    vmem_spec = pl.BlockSpec(memory_space=pltpu.MemorySpace.VMEM)

    out = pl.pallas_call(
        kernel,
        out_shape=jax.ShapeDtypeStruct((1, n_output), jnp.float32),
        in_specs=[vmem_spec] * 7,
        out_specs=vmem_spec,
        # Headroom hint for larger seq_len/hidden configs (v5e 16 MiB / v7x
        # 32 MiB default scoped VMEM); at these sizes it is far from binding.
        compiler_params=pltpu.CompilerParams(vmem_limit_bytes=32 * 1024 * 1024),
    )(x, wih0, wihr, whh, bsum, wlin, blin)
    return out[0]  # shape (n_output,), matches `linear(...)[-1]`


def init_params(key, n_input, n_hidden, n_layer, n_output):
    """Deterministic init mimicking PyTorch's U(-1/sqrt(H), 1/sqrt(H))."""
    bound = 1.0 / jnp.sqrt(jnp.float32(n_hidden))
    ks = jax.random.split(key, 7)
    u = lambda k, shape: jax.random.uniform(k, shape, jnp.float32, -bound, bound)
    wih0 = u(ks[0], (n_input, n_hidden))                        # layer-0 W_ih^T
    wihr = u(ks[1], (max(n_layer - 1, 1), n_hidden, n_hidden))  # layers 1.. W_ih^T
    whh = u(ks[2], (n_layer, n_hidden, n_hidden))               # W_hh^T per layer
    bih = u(ks[3], (n_layer, n_hidden))
    bhh = u(ks[4], (n_layer, n_hidden))
    wlin = u(ks[5], (n_hidden, n_output))
    blin = u(ks[6], (1, n_output))
    return wih0, wihr, whh, bih, bhh, wlin, blin


def reference_forward(x, params, n_layer, nonlinearity="tanh"):
    """Pure-JAX reference with identical semantics (for verification)."""
    wih0, wihr, whh, bih, bhh, wlin, blin = params
    act = jnp.tanh if nonlinearity == "tanh" else jax.nn.relu
    inp = x
    for layer in range(n_layer):
        wih = wih0 if layer == 0 else wihr[layer - 1]
        h = jnp.zeros((whh.shape[-1],), jnp.float32)
        outs = []
        for t in range(inp.shape[0]):
            h = act(inp[t] @ wih + bih[layer] + h @ whh[layer] + bhh[layer])
            outs.append(h)
        inp = jnp.stack(outs)
    return inp[-1] @ wlin + blin[0]


if __name__ == "__main__":
    # Small, shape-consistent configuration: n_output = 1 (required by module),
    # n_input = 4, n_hidden_layer = 32, n_layer = 2, seq_len = 8.
    n_input, n_hidden, n_layer, n_output = 4, 32, 2, 1
    seq_len = 8
    nonlinearity = "tanh"

    key = jax.random.PRNGKey(0)
    key_x, key_p = jax.random.split(key)
    x = jax.random.normal(key_x, (seq_len, n_input), jnp.float32)
    params = init_params(key_p, n_input, n_hidden, n_layer, n_output)

    y = custom_model_forward(x, params, n_layer=n_layer,
                             nonlinearity=nonlinearity)
    y = jax.block_until_ready(y)

    y_ref = reference_forward(x, params, n_layer, nonlinearity)
    assert y.shape == (n_output,)
    assert jnp.allclose(y, y_ref, atol=1e-5, rtol=1e-5), (y, y_ref)

    print("KERNEL_OK")
</pallas_src>

<mosaic_0001>
module attributes {stable_mosaic.version = 11 : i64} {
  func.func @_rnn_linear_kernel(%arg0: memref<8x4xf32, #tpu.memory_space<vmem>>, %arg1: memref<4x32xf32, #tpu.memory_space<vmem>>, %arg2: memref<1x32x32xf32, #tpu.memory_space<vmem>>, %arg3: memref<2x32x32xf32, #tpu.memory_space<vmem>>, %arg4: memref<2x32xf32, #tpu.memory_space<vmem>>, %arg5: memref<32x1xf32, #tpu.memory_space<vmem>>, %arg6: memref<1x1xf32, #tpu.memory_space<vmem>>, %arg7: memref<1x1xf32, #tpu.memory_space<vmem>>) attributes {dimension_semantics = [], scalar_prefetch = 0 : i64, scratch_operands = 0 : i64, tpu.core_type = #tpu.core_type<tc>} {
    %c0 = arith.constant 0 : index
    %c0_0 = arith.constant 0 : index
    %0 = vector.load %arg0[%c0, %c0_0] : memref<8x4xf32, #tpu.memory_space<vmem>>, vector<8x4xf32>
    %c0_1 = arith.constant 0 : index
    %c0_2 = arith.constant 0 : index
    %1 = vector.load %arg1[%c0_1, %c0_2] : memref<4x32xf32, #tpu.memory_space<vmem>>, vector<4x32xf32>
    %c0_3 = arith.constant 0 : index
    %c0_4 = arith.constant 0 : index
    %c0_5 = arith.constant 0 : index
    %2 = vector.load %arg3[%c0_3, %c0_4, %c0_5] : memref<2x32x32xf32, #tpu.memory_space<vmem>>, vector<1x32x32xf32>
    %3 = vector.shape_cast %2 : vector<1x32x32xf32> to vector<32x32xf32>
    %c0_6 = arith.constant 0 : index
    %c0_7 = arith.constant 0 : index
    %4 = vector.load %arg4[%c0_6, %c0_7] : memref<2x32xf32, #tpu.memory_space<vmem>>, vector<1x32xf32>
    %cst = arith.constant dense<0.000000e+00> : vector<8x32xf32>
    %5 = tpu.matmul %0, %1, %cst {dimension_numbers = #tpu.dot_dimension_numbers<[1], [0], [0], [1], [0, 0, 1, 1], [], []>} : vector<8x4xf32>, vector<4x32xf32>, vector<8x32xf32> -> vector<8x32xf32>
    %6 = vector.broadcast %4 : vector<1x32xf32> to vector<8x32xf32>
    %7 = arith.addf %5, %6 : vector<8x32xf32>
    %cst_8 = arith.constant 0.000000e+00 : f32
    %8 = vector.broadcast %cst_8 : f32 to vector<1x32xf32>
    %9 = vector.extract_strided_slice %7 {offsets = [0, 0], sizes = [1, 32], strides = [1, 1]} : vector<8x32xf32> to vector<1x32xf32>
    %cst_9 = arith.constant dense<0.000000e+00> : vector<1x32xf32>
    %10 = tpu.matmul %8, %3, %cst_9 {dimension_numbers = #tpu.dot_dimension_numbers<[1], [0], [0], [1], [0, 0, 1, 1], [], []>} : vector<1x32xf32>, vector<32x32xf32>, vector<1x32xf32> -> vector<1x32xf32>
    %11 = arith.addf %9, %10 : vector<1x32xf32>
    %12 = math.tanh %11 : vector<1x32xf32>
    %13 = vector.extract_strided_slice %7 {offsets = [1, 0], sizes = [1, 32], strides = [1, 1]} : vector<8x32xf32> to vector<1x32xf32>
    %cst_10 = arith.constant dense<0.000000e+00> : vector<1x32xf32>
    %14 = tpu.matmul %12, %3, %cst_10 {dimension_numbers = #tpu.dot_dimension_numbers<[1], [0], [0], [1], [0, 0, 1, 1], [], []>} : vector<1x32xf32>, vector<32x32xf32>, vector<1x32xf32> -> vector<1x32xf32>
    %15 = arith.addf %13, %14 : vector<1x32xf32>
    %16 = math.tanh %15 : vector<1x32xf32>
    %17 = vector.extract_strided_slice %7 {offsets = [2, 0], sizes = [1, 32], strides = [1, 1]} : vector<8x32xf32> to vector<1x32xf32>
    %cst_11 = arith.constant dense<0.000000e+00> : vector<1x32xf32>
    %18 = tpu.matmul %16, %3, %cst_11 {dimension_numbers = #tpu.dot_dimension_numbers<[1], [0], [0], [1], [0, 0, 1, 1], [], []>} : vector<1x32xf32>, vector<32x32xf32>, vector<1x32xf32> -> vector<1x32xf32>
    %19 = arith.addf %17, %18 : vector<1x32xf32>
    %20 = math.tanh %19 : vector<1x32xf32>
    %21 = vector.extract_strided_slice %7 {offsets = [3, 0], sizes = [1, 32], strides = [1, 1]} : vector<8x32xf32> to vector<1x32xf32>
    %cst_12 = arith.constant dense<0.000000e+00> : vector<1x32xf32>
    %22 = tpu.matmul %20, %3, %cst_12 {dimension_numbers = #tpu.dot_dimension_numbers<[1], [0], [0], [1], [0, 0, 1, 1], [], []>} : vector<1x32xf32>, vector<32x32xf32>, vector<1x32xf32> -> vector<1x32xf32>
    %23 = arith.addf %21, %22 : vector<1x32xf32>
    %24 = math.tanh %23 : vector<1x32xf32>
    %25 = vector.extract_strided_slice %7 {offsets = [4, 0], sizes = [1, 32], strides = [1, 1]} : vector<8x32xf32> to vector<1x32xf32>
    %cst_13 = arith.constant dense<0.000000e+00> : vector<1x32xf32>
    %26 = tpu.matmul %24, %3, %cst_13 {dimension_numbers = #tpu.dot_dimension_numbers<[1], [0], [0], [1], [0, 0, 1, 1], [], []>} : vector<1x32xf32>, vector<32x32xf32>, vector<1x32xf32> -> vector<1x32xf32>
    %27 = arith.addf %25, %26 : vector<1x32xf32>
    %28 = math.tanh %27 : vector<1x32xf32>
    %29 = vector.extract_strided_slice %7 {offsets = [5, 0], sizes = [1, 32], strides = [1, 1]} : vector<8x32xf32> to vector<1x32xf32>
    %cst_14 = arith.constant dense<0.000000e+00> : vector<1x32xf32>
    %30 = tpu.matmul %28, %3, %cst_14 {dimension_numbers = #tpu.dot_dimension_numbers<[1], [0], [0], [1], [0, 0, 1, 1], [], []>} : vector<1x32xf32>, vector<32x32xf32>, vector<1x32xf32> -> vector<1x32xf32>
    %31 = arith.addf %29, %30 : vector<1x32xf32>
    %32 = math.tanh %31 : vector<1x32xf32>
    %33 = vector.extract_strided_slice %7 {offsets = [6, 0], sizes = [1, 32], strides = [1, 1]} : vector<8x32xf32> to vector<1x32xf32>
    %cst_15 = arith.constant dense<0.000000e+00> : vector<1x32xf32>
    %34 = tpu.matmul %32, %3, %cst_15 {dimension_numbers = #tpu.dot_dimension_numbers<[1], [0], [0], [1], [0, 0, 1, 1], [], []>} : vector<1x32xf32>, vector<32x32xf32>, vector<1x32xf32> -> vector<1x32xf32>
    %35 = arith.addf %33, %34 : vector<1x32xf32>
    %36 = math.tanh %35 : vector<1x32xf32>
    %37 = vector.extract_strided_slice %7 {offsets = [7, 0], sizes = [1, 32], strides = [1, 1]} : vector<8x32xf32> to vector<1x32xf32>
    %cst_16 = arith.constant dense<0.000000e+00> : vector<1x32xf32>
    %38 = tpu.matmul %36, %3, %cst_16 {dimension_numbers = #tpu.dot_dimension_numbers<[1], [0], [0], [1], [0, 0, 1, 1], [], []>} : vector<1x32xf32>, vector<32x32xf32>, vector<1x32xf32> -> vector<1x32xf32>
    %39 = arith.addf %37, %38 : vector<1x32xf32>
    %40 = math.tanh %39 : vector<1x32xf32>
    %41 = tpu.concatenate %12, %16, %20, %24, %28, %32, %36, %40 in 0 : vector<1x32xf32>, vector<1x32xf32>, vector<1x32xf32>, vector<1x32xf32>, vector<1x32xf32>, vector<1x32xf32>, vector<1x32xf32>, vector<1x32xf32> -> vector<8x32xf32>
    %c0_17 = arith.constant 0 : index
    %c0_18 = arith.constant 0 : index
    %c0_19 = arith.constant 0 : index
    %42 = vector.load %arg2[%c0_17, %c0_18, %c0_19] : memref<1x32x32xf32, #tpu.memory_space<vmem>>, vector<1x32x32xf32>
    %43 = vector.shape_cast %42 : vector<1x32x32xf32> to vector<32x32xf32>
    %c1 = arith.constant 1 : index
    %c0_20 = arith.constant 0 : index
    %c0_21 = arith.constant 0 : index
    %44 = vector.load %arg3[%c1, %c0_20, %c0_21] : memref<2x32x32xf32, #tpu.memory_space<vmem>>, vector<1x32x32xf32>
    %45 = vector.shape_cast %44 : vector<1x32x32xf32> to vector<32x32xf32>
    %c1_22 = arith.constant 1 : index
    %c0_23 = arith.constant 0 : index
    %46 = vector.load %arg4[%c1_22, %c0_23] : memref<2x32xf32, #tpu.memory_space<vmem>>, vector<1x32xf32>
    %cst_24 = arith.constant dense<0.000000e+00> : vector<8x32xf32>
    %47 = tpu.matmul %41, %43, %cst_24 {dimension_numbers = #tpu.dot_dimension_numbers<[1], [0], [0], [1], [0, 0, 1, 1], [], []>} : vector<8x32xf32>, vector<32x32xf32>, vector<8x32xf32> -> vector<8x32xf32>
    %48 = vector.broadcast %46 : vector<1x32xf32> to vector<8x32xf32>
    %49 = arith.addf %47, %48 : vector<8x32xf32>
    %cst_25 = arith.constant 0.000000e+00 : f32
    %50 = vector.broadcast %cst_25 : f32 to vector<1x32xf32>
    %51 = vector.extract_strided_slice %49 {offsets = [0, 0], sizes = [1, 32], strides = [1, 1]} : vector<8x32xf32> to vector<1x32xf32>
    %cst_26 = arith.constant dense<0.000000e+00> : vector<1x32xf32>
    %52 = tpu.matmul %50, %45, %cst_26 {dimension_numbers = #tpu.dot_dimension_numbers<[1], [0], [0], [1], [0, 0, 1, 1], [], []>} : vector<1x32xf32>, vector<32x32xf32>, vector<1x32xf32> -> vector<1x32xf32>
    %53 = arith.addf %51, %52 : vector<1x32xf32>
    %54 = math.tanh %53 : vector<1x32xf32>
    %55 = vector.extract_strided_slice %49 {offsets = [1, 0], sizes = [1, 32], strides = [1, 1]} : vector<8x32xf32> to vector<1x32xf32>
    %cst_27 = arith.constant dense<0.000000e+00> : vector<1x32xf32>
    %56 = tpu.matmul %54, %45, %cst_27 {dimension_numbers = #tpu.dot_dimension_numbers<[1], [0], [0], [1], [0, 0, 1, 1], [], []>} : vector<1x32xf32>, vector<32x32xf32>, vector<1x32xf32> -> vector<1x32xf32>
    %57 = arith.addf %55, %56 : vector<1x32xf32>
    %58 = math.tanh %57 : vector<1x32xf32>
    %59 = vector.extract_strided_slice %49 {offsets = [2, 0], sizes = [1, 32], strides = [1, 1]} : vector<8x32xf32> to vector<1x32xf32>
    %cst_28 = arith.constant dense<0.000000e+00> : vector<1x32xf32>
    %60 = tpu.matmul %58, %45, %cst_28 {dimension_numbers = #tpu.dot_dimension_numbers<[1], [0], [0], [1], [0, 0, 1, 1], [], []>} : vector<1x32xf32>, vector<32x32xf32>, vector<1x32xf32> -> vector<1x32xf32>
    %61 = arith.addf %59, %60 : vector<1x32xf32>
    %62 = math.tanh %61 : vector<1x32xf32>
    %63 = vector.extract_strided_slice %49 {offsets = [3, 0], sizes = [1, 32], strides = [1, 1]} : vector<8x32xf32> to vector<1x32xf32>
    %cst_29 = arith.constant dense<0.000000e+00> : vector<1x32xf32>
    %64 = tpu.matmul %62, %45, %cst_29 {dimension_numbers = #tpu.dot_dimension_numbers<[1], [0], [0], [1], [0, 0, 1, 1], [], []>} : vector<1x32xf32>, vector<32x32xf32>, vector<1x32xf32> -> vector<1x32xf32>
    %65 = arith.addf %63, %64 : vector<1x32xf32>
    %66 = math.tanh %65 : vector<1x32xf32>
    %67 = vector.extract_strided_slice %49 {offsets = [4, 0], sizes = [1, 32], strides = [1, 1]} : vector<8x32xf32> to vector<1x32xf32>
    %cst_30 = arith.constant dense<0.000000e+00> : vector<1x32xf32>
    %68 = tpu.matmul %66, %45, %cst_30 {dimension_numbers = #tpu.dot_dimension_numbers<[1], [0], [0], [1], [0, 0, 1, 1], [], []>} : vector<1x32xf32>, vector<32x32xf32>, vector<1x32xf32> -> vector<1x32xf32>
    %69 = arith.addf %67, %68 : vector<1x32xf32>
    %70 = math.tanh %69 : vector<1x32xf32>
    %71 = vector.extract_strided_slice %49 {offsets = [5, 0], sizes = [1, 32], strides = [1, 1]} : vector<8x32xf32> to vector<1x32xf32>
    %cst_31 = arith.constant dense<0.000000e+00> : vector<1x32xf32>
    %72 = tpu.matmul %70, %45, %cst_31 {dimension_numbers = #tpu.dot_dimension_numbers<[1], [0], [0], [1], [0, 0, 1, 1], [], []>} : vector<1x32xf32>, vector<32x32xf32>, vector<1x32xf32> -> vector<1x32xf32>
    %73 = arith.addf %71, %72 : vector<1x32xf32>
    %74 = math.tanh %73 : vector<1x32xf32>
    %75 = vector.extract_strided_slice %49 {offsets = [6, 0], sizes = [1, 32], strides = [1, 1]} : vector<8x32xf32> to vector<1x32xf32>
    %cst_32 = arith.constant dense<0.000000e+00> : vector<1x32xf32>
    %76 = tpu.matmul %74, %45, %cst_32 {dimension_numbers = #tpu.dot_dimension_numbers<[1], [0], [0], [1], [0, 0, 1, 1], [], []>} : vector<1x32xf32>, vector<32x32xf32>, vector<1x32xf32> -> vector<1x32xf32>
    %77 = arith.addf %75, %76 : vector<1x32xf32>
    %78 = math.tanh %77 : vector<1x32xf32>
    %79 = vector.extract_strided_slice %49 {offsets = [7, 0], sizes = [1, 32], strides = [1, 1]} : vector<8x32xf32> to vector<1x32xf32>
    %cst_33 = arith.constant dense<0.000000e+00> : vector<1x32xf32>
    %80 = tpu.matmul %78, %45, %cst_33 {dimension_numbers = #tpu.dot_dimension_numbers<[1], [0], [0], [1], [0, 0, 1, 1], [], []>} : vector<1x32xf32>, vector<32x32xf32>, vector<1x32xf32> -> vector<1x32xf32>
    %81 = arith.addf %79, %80 : vector<1x32xf32>
    %82 = math.tanh %81 : vector<1x32xf32>
    %c0_34 = arith.constant 0 : index
    %c0_35 = arith.constant 0 : index
    %83 = vector.load %arg5[%c0_34, %c0_35] : memref<32x1xf32, #tpu.memory_space<vmem>>, vector<32x1xf32>
    %cst_36 = arith.constant dense<0.000000e+00> : vector<1x1xf32>
    %84 = tpu.matmul %82, %83, %cst_36 {dimension_numbers = #tpu.dot_dimension_numbers<[1], [0], [0], [1], [0, 0, 1, 1], [], []>} : vector<1x32xf32>, vector<32x1xf32>, vector<1x1xf32> -> vector<1x1xf32>
    %c0_37 = arith.constant 0 : index
    %c0_38 = arith.constant 0 : index
    %85 = vector.load %arg6[%c0_37, %c0_38] : memref<1x1xf32, #tpu.memory_space<vmem>>, vector<1x1xf32>
    %86 = arith.addf %84, %85 : vector<1x1xf32>
    %c0_39 = arith.constant 0 : index
    %c0_40 = arith.constant 0 : index
    %87 = vector.load %arg7[%c0_39, %c0_40] : memref<1x1xf32, #tpu.memory_space<vmem>>, vector<1x1xf32>
    tpu.vector_store %arg7[%c0_39, %c0_40], %86 {strides = array<i32>} : memref<1x1xf32, #tpu.memory_space<vmem>>, vector<1x1xf32>,
    return
  }
}

</mosaic_0001>

<bundles_post_ra>
// kernel: tpu_custom_call.1
= control target key start
LH: loop header
LB: loop body
LE: loop exit
PB: predicated region body
PF: predicated region fallthrough
CT: control target
= control target key end

     0   :  { %s857_s0 = inlined_call_operand.vmem [shape: f32[8,4], index: 0, kind: input, shape index: {}]   ;;  %s858_s1 = inlined_call_operand.vmem [shape: f32[4,32], index: 1, kind: input, shape index: {}]   ;;  %s859_s2 = inlined_call_operand.vmem [shape: f32[1,32,32], index: 2, kind: input, shape index: {}]   ;;  %s860_s3 = inlined_call_operand.hbm [shape: f32[2,32,32], index: 3, kind: input, shape index: {}]   ;;  %s861_s4 = inlined_call_operand.vmem [shape: f32[2,32], index: 4, kind: input, shape index: {}]   ;;  %s862_s5 = inlined_call_operand.vmem [shape: f32[32,1], index: 5, kind: input, shape index: {}]   ;;  %s863_s6 = inlined_call_operand.<no memory space> [shape: f32[1,1], index: 6, kind: input, shape index: {}]   ;;  %s864_s7 = inlined_call_operand.hbm [shape: f32[1,1], index: 7, kind: output, shape index: {}]  }
   0x1   :  { %v12_v0 = vstv %s863_s6 }
   0x2   :  { %13 = vst [vmem:[#allocation2] sm:$0x1] %v12_v0 }
   0x3   :  { %14 = vsyncpa [#allocation4], 0 }
   0x4   :  { %15 = vsyncpa [#allocation5], 0  ;;  %s26_s28 = sshll.u32 %s860_s3, 4  ;;  %s737_s29 = smov [#allocation3]   ;;  %s27_s28 = int_to_ptr.hbm [resolvable:$true] %s26_s28 }
   0x5   :  { %s28_s30 = sshll.u32 %s737_s29, 4  ;;  %s738_s8 = smov 128   ;;  %s29_s30 = int_to_ptr.vmem [resolvable:$true] %s28_s30 }
   0x6   :  { %s739_s9 = smov 8  }
   0x7   :  { %34 = dma.hbm_to_vmem [thread:$0]  %s27_s28, 1024, %s29_s30, [#allocation4], %s738_s8, %s738_s8, %s739_s9  }
   0x8   :  { %733 = dma.done.wait [#allocation4], 1024  }
   0x9   :  { %734 = vsyncadd [#allocation4], 4294966272  ;;  %vm57_vm0 = vcmask 1043456   ;;  %vm53_vm1 = vcmask 31744   ;;  %v50_v1 = vld [vmem:[#allocation3 + $0x18] sm:$0xff]  ;;  %v49_v2 = vld [vmem:[#allocation3 + $0x10] sm:$0xff] }
   0xa   :  { %v46_v3 = vld [vmem:[%s858_s1] sm:$0xf]  ;;  %97 = vmatpush.msra.mxu1 %v50_v1  ;;  %v48_v5 = vld [vmem:[#allocation3 + $0x8] sm:$0xff]  ;;  %122 = vmatpush.msra.mxu2 %v50_v1  ;;  %v740_v7 = vmov 0.0   ;;  %vm81_vm2 = vcmask 261120   ;;  %vm309_vm3 = vcmask 1040384  }
   0xb   :  { %628 = vmatpush.msk.msra.mxu0 %vm57_vm0, %v46_v3  ;;  %v45_v4 = vld [vmem:[%s857_s0] sm:$0xff]  ;;  %151 = vmatpush.msra.mxu3 %v50_v1  ;;  %vm311_vm4 = vcmask 1041408   ;;  %vm313_vm5 = vcmask 1042432   ;;  %vm316_vm6 = vcmask 1044480   ;;  %vm318_vm7 = vcmask 1045504   ;;  %v329_v51 = vld [vmem:[#allocation3 + $0x30] sm:$0xff] }
   0xc   :  { %629 = vmatmul.msk.f32.vlgmr.msra.gmra.mxu0 %vm53_vm1, %v45_v4  ;;  %98 = vmatpush.msra.mxu1 %v49_v2  ;;  %v47_v6 = vld [vmem:[#allocation3] sm:$0xff]  ;;  %v651_v8 = vld [vmem:[%s861_s4] ss:$0 sm:$0xff]  ;;  %v325_v52 = vld [vmem:[%s859_s2 + $0x18] sm:$0xff]  ;;  %vm320_vm8 = vcmask 1046528   ;;  %s741_s28 = smov [#allocation6]  }
   0xd   :  { %123 = vmatpush.msra.mxu2 %v49_v2  ;;  %180 = vmatpush.msrb.mxu0 %v50_v1  ;;  %v330_v50 = vld [vmem:[#allocation3 + $0x38] sm:$0xff]  ;;  %v328_v53 = vld [vmem:[#allocation3 + $0x28] sm:$0xff]  ;;  %v327_v55 = vld [vmem:[#allocation3 + $0x20] sm:$0xff]  ;;  %s616_s29 = sshll.u32 %s741_s28, 4  ;;  %s618_s9 = sshll.u32 %s864_s7, 4  ;;  %vm609_vm9 = vcmask 0   ;;  %s617_s29 = int_to_ptr.vmem [resolvable:$true] %s616_s29  ;;  %s619_s9 = int_to_ptr.hbm [resolvable:$true] %s618_s9 }
   0xe   :  { %99 = vmatpush.msra.mxu1 %v48_v5  ;;  %152 = vmatpush.msra.mxu3 %v49_v2  ;;  %v324_v54 = vld [vmem:[%s859_s2 + $0x10] sm:$0xff]  ;;  %v323_v56 = vld [vmem:[%s859_s2 + $0x8] sm:$0xff]  ;;  %v322_v57 = vld [vmem:[%s859_s2] sm:$0xff] }
   0xf   :  { %124 = vmatpush.msra.mxu2 %v48_v5  ;;  %181 = vmatpush.msrb.mxu0 %v49_v2  ;;  %v652_v63 = vld [vmem:[%s861_s4 + $0x1] ss:$0 sm:$0xff] }
  0x10   :  { %100 = vmatpush.msra.mxu1 %v47_v6  ;;  %153 = vmatpush.msra.mxu3 %v48_v5 }
  0x11   :  { %101 = vmatmul.f32.vlgmr.msra.gmra.mxu1 %v740_v7  ;;  %125 = vmatpush.msra.mxu2 %v47_v6 }
  0x12   :  { %154 = vmatpush.msra.mxu3 %v47_v6  ;;  %182 = vmatpush.msrb.mxu0 %v48_v5 }
  0x13   :  { %209 = vmatpush.msrb.mxu1 %v50_v1  ;;  %238 = vmatpush.msrb.mxu2 %v50_v1 }
  0x14   :  { %183 = vmatpush.msrb.mxu0 %v47_v6  ;;  %267 = vmatpush.msrb.mxu3 %v50_v1 }
  0x15   :  { %210 = vmatpush.msrb.mxu1 %v49_v2  ;;  %239 = vmatpush.msrb.mxu2 %v49_v2 }
  0x16   :  { %268 = vmatpush.msrb.mxu3 %v49_v2  ;;  %296 = vmatpush.msra.mxu0 %v50_v1 }
  0x17   :  { %211 = vmatpush.msrb.mxu1 %v48_v5  ;;  %240 = vmatpush.msrb.mxu2 %v48_v5 }
  0x18   :  { %269 = vmatpush.msrb.mxu3 %v48_v5  ;;  %297 = vmatpush.msra.mxu0 %v49_v2 }
  0x19   :  { %212 = vmatpush.msrb.mxu1 %v47_v6  ;;  %241 = vmatpush.msrb.mxu2 %v47_v6 }
  0x1a   :  { %270 = vmatpush.msrb.mxu3 %v47_v6  ;;  %298 = vmatpush.msra.mxu0 %v48_v5 }
  0x1b   :  { %348 = vmatpush.msra.mxu1 %v325_v52 }
  0x1c   :  { %299 = vmatpush.msra.mxu0 %v47_v6 }
  0x1d   :  { %349 = vmatpush.msra.mxu1 %v324_v54 }
  0x1f   :  { %350 = vmatpush.msra.mxu1 %v323_v56 }
  0x21   :  { %351 = vmatpush.msra.mxu1 %v322_v57 }
  0x89   :  { %v78_v9 = vpop.f32.mrf.mxu0 }
  0x8a   :  { %v799_v10 = vadd.f32 %v651_v8, %v78_v9 }
  0x8e   :  { %v102_v11 = vpop.f32.mrf.mxu1 }
  0x8f   :  { %v105_v12 = vadd.f32 %v102_v11, %v799_v10 }
  0x91   :  { %653 = vtanh.f32 %v105_v12 }
  0x97   :  { %v654_v13 = vpop.eup %653 }
  0x98   :  { %630 = vmatmul.msk.f32.vlgmr.msra.gmra.mxu2 %vm81_vm2, %v654_v13 }
  0x99   :  { %368 = vmatpush.msra.mxu2 %v330_v50 }
  0x9b   :  { %369 = vmatpush.msra.mxu2 %v329_v51 }
  0x9d   :  { %370 = vmatpush.msra.mxu2 %v328_v53 }
  0x9f   :  { %371 = vmatpush.msra.mxu2 %v327_v55 }
 0x11b   :  { %v127_v14 = vpop.f32.mrf.mxu2 }
 0x11c   :  { %v131_v15 = vrot.slane %v127_v14, 7 }
 0x11e   :  { %v133_v16 = vadd.f32 %v131_v15, %v799_v10 }
 0x120   :  { %655 = vtanh.f32 %v133_v16 }
 0x126   :  { %v656_v17 = vpop.eup %655 }
 0x127   :  { %v136_v18 = vrot.slane %v656_v17, 1  ;;  %v310_v23 = vsel %vm309_vm3, %v654_v13, %v656_v17 }
 0x129   :  { %631 = vmatmul.msk.f32.vlgmr.msra.gmra.mxu3 %vm81_vm2, %v136_v18 }
 0x12a   :  { %393 = vmatpush.msra.mxu3 %v330_v50 }
 0x12c   :  { %394 = vmatpush.msra.mxu3 %v329_v51 }
 0x12e   :  { %395 = vmatpush.msra.mxu3 %v328_v53 }
 0x130   :  { %396 = vmatpush.msra.mxu3 %v327_v55 }
 0x1ac   :  { %v156_v19 = vpop.f32.mrf.mxu3 }
 0x1ad   :  { %v160_v20 = vrot.slane %v156_v19, 6 }
 0x1af   :  { %v162_v21 = vadd.f32 %v160_v20, %v799_v10 }
 0x1b1   :  { %657 = vtanh.f32 %v162_v21 }
 0x1b7   :  { %v658_v22 = vpop.eup %657 }
 0x1b8   :  { %v165_v24 = vrot.slane %v658_v22, 2  ;;  %v312_v25 = vsel %vm311_vm4, %v310_v23, %v658_v22 }
 0x1ba   :  { %632 = vmatmul.msk.f32.vlgmr.msrb.gmra.mxu0 %vm81_vm2, %v165_v24 }
 0x1bb   :  { %422 = vmatpush.msrb.mxu0 %v330_v50 }
 0x1bd   :  { %423 = vmatpush.msrb.mxu0 %v329_v51 }
 0x1bf   :  { %424 = vmatpush.msrb.mxu0 %v328_v53 }
 0x1c1   :  { %425 = vmatpush.msrb.mxu0 %v327_v55 }
 0x237   :  { %v185_v26 = vpop.f32.mrf.mxu0 }
 0x238   :  { %v189_v27 = vrot.slane %v185_v26, 5 }
 0x23a   :  { %v191_v28 = vadd.f32 %v189_v27, %v799_v10 }
 0x23c   :  { %659 = vtanh.f32 %v191_v28 }
 0x242   :  { %v660_v29 = vpop.eup %659 }
 0x243   :  { %v194_v30 = vrot.slane %v660_v29, 3  ;;  %v314_v31 = vsel %vm313_vm5, %v312_v25, %v660_v29 }
 0x245   :  { %633 = vmatmul.msk.f32.vlgmr.msrb.gmra.mxu1 %vm81_vm2, %v194_v30 }
 0x246   :  { %451 = vmatpush.msrb.mxu1 %v330_v50 }
 0x248   :  { %452 = vmatpush.msrb.mxu1 %v329_v51 }
 0x24a   :  { %453 = vmatpush.msrb.mxu1 %v328_v53 }
 0x24c   :  { %454 = vmatpush.msrb.mxu1 %v327_v55 }
 0x2c2   :  { %v214_v32 = vpop.f32.mrf.mxu1 }
 0x2c3   :  { %v218_v33 = vrot.slane %v214_v32, 4 }
 0x2c5   :  { %v220_v34 = vadd.f32 %v218_v33, %v799_v10 }
 0x2c7   :  { %661 = vtanh.f32 %v220_v34 }
 0x2cd   :  { %v662_v35 = vpop.eup %661 }
 0x2ce   :  { %v223_v36 = vrot.slane %v662_v35, 4  ;;  %v315_v37 = vsel %vm57_vm0, %v314_v31, %v662_v35  ;;  %v583_v35 = vld [vmem:[%s862_s5 + $0x18] sm:$0xff] }
 0x2d0   :  { %634 = vmatmul.msk.f32.vlgmr.msrb.gmra.mxu2 %vm81_vm2, %v223_v36  ;;  %v582_v36 = vld [vmem:[%s862_s5 + $0x10] sm:$0xff] }
 0x2d1   :  { %480 = vmatpush.msrb.mxu2 %v330_v50 }
 0x2d3   :  { %481 = vmatpush.msrb.mxu2 %v329_v51 }
 0x2d5   :  { %482 = vmatpush.msrb.mxu2 %v328_v53 }
 0x2d7   :  { %483 = vmatpush.msrb.mxu2 %v327_v55 }
 0x2d8   :  { %372 = vmatmul.f32.vlgmr.msra.gmra.mxu2 %v740_v7 }
 0x2d9   :  { %601 = vmatpush.msra.mxu2 %v583_v35 }
 0x2db   :  { %602 = vmatpush.msra.mxu2 %v582_v36 }
 0x353   :  { %v243_v38 = vpop.f32.mrf.mxu2 }
 0x354   :  { %v247_v39 = vrot.slane %v243_v38, 3  ;;  %v580_v38 = vld [vmem:[%s862_s5] sm:$0xff] }
 0x356   :  { %v249_v40 = vadd.f32 %v247_v39, %v799_v10 }
 0x358   :  { %663 = vtanh.f32 %v249_v40 }
 0x35b   :  { %v373_v1 = vpop.f32.mrf.mxu2 }
 0x35e   :  { %v664_v41 = vpop.eup %663 }
 0x35f   :  { %v252_v42 = vrot.slane %v664_v41, 5  ;;  %v317_v43 = vsel %vm316_vm6, %v315_v37, %v664_v41  ;;  %v581_v37 = vld [vmem:[%s862_s5 + $0x8] sm:$0xff] }
 0x360   :  { %603 = vmatpush.msra.mxu2 %v581_v37 }
 0x361   :  { %635 = vmatmul.msk.f32.vlgmr.msrb.gmra.mxu3 %vm81_vm2, %v252_v42 }
 0x362   :  { %509 = vmatpush.msrb.mxu3 %v330_v50  ;;  %604 = vmatpush.msra.mxu2 %v580_v38 }
 0x364   :  { %510 = vmatpush.msrb.mxu3 %v329_v51 }
 0x366   :  { %511 = vmatpush.msrb.mxu3 %v328_v53 }
 0x368   :  { %512 = vmatpush.msrb.mxu3 %v327_v55 }
 0x3e4   :  { %v272_v44 = vpop.f32.mrf.mxu3 }
 0x3e5   :  { %v276_v45 = vrot.slane %v272_v44, 2  ;;  %v584_v44 = vld [vmem:[#allocation2] sm:$0x1] }
 0x3e7   :  { %v278_v46 = vadd.f32 %v276_v45, %v799_v10 }
 0x3e9   :  { %665 = vtanh.f32 %v278_v46 }
 0x3ef   :  { %v666_v47 = vpop.eup %665 }
 0x3f0   :  { %v281_v48 = vrot.slane %v666_v47, 6  ;;  %v319_v49 = vsel %vm318_vm7, %v317_v43, %v666_v47 }
 0x3f2   :  { %636 = vmatmul.msk.f32.vlgmr.msra.gmra.mxu0 %vm81_vm2, %v281_v48 }
 0x3f3   :  { %538 = vmatpush.msra.mxu0 %v330_v50 }
 0x3f5   :  { %539 = vmatpush.msra.mxu0 %v329_v51 }
 0x3f7   :  { %540 = vmatpush.msra.mxu0 %v328_v53 }
 0x3f9   :  { %541 = vmatpush.msra.mxu0 %v327_v55 }
 0x46f   :  { %v301_v58 = vpop.f32.mrf.mxu0 }
 0x470   :  { %v305_v59 = vrot.slane %v301_v58, 1 }
 0x472   :  { %v307_v60 = vadd.f32 %v305_v59, %v799_v10 }
 0x474   :  { %667 = vtanh.f32 %v307_v60 }
 0x47a   :  { %v668_v61 = vpop.eup %667 }
 0x47b   :  { %v321_v62 = vsel %vm320_vm8, %v319_v49, %v668_v61 }
 0x47c   :  { %637 = vmatmul.msk.f32.vlgmr.msra.gmra.mxu1 %vm81_vm2, %v321_v62 }
 0x47d   :  { %567 = vmatpush.msra.mxu1 %v330_v50 }
 0x47f   :  { %568 = vmatpush.msra.mxu1 %v329_v51 }
 0x481   :  { %569 = vmatpush.msra.mxu1 %v328_v53 }
 0x483   :  { %570 = vmatpush.msra.mxu1 %v327_v55 }
 0x4f9   :  { %v353_v0 = vpop.f32.mrf.mxu1 }
 0x4fa   :  { %v354_v2 = vadd.f32 %v652_v63, %v353_v0 }
 0x4fc   :  { %v376_v3 = vadd.f32 %v373_v1, %v354_v2 }
 0x4fe   :  { %669 = vtanh.f32 %v376_v3 }
 0x504   :  { %v670_v4 = vpop.eup %669 }
 0x505   :  { %638 = vmatmul.msk.f32.vlgmr.msra.gmra.mxu3 %vm81_vm2, %v670_v4 }
 0x588   :  { %v398_v5 = vpop.f32.mrf.mxu3 }
 0x589   :  { %v402_v6 = vrot.slane %v398_v5, 7 }
 0x58b   :  { %v404_v7 = vadd.f32 %v402_v6, %v354_v2 }
 0x58d   :  { %671 = vtanh.f32 %v404_v7 }
 0x593   :  { %v672_v8 = vpop.eup %671 }
 0x594   :  { %v407_v9 = vrot.slane %v672_v8, 1 }
 0x596   :  { %639 = vmatmul.msk.f32.vlgmr.msrb.gmra.mxu0 %vm81_vm2, %v407_v9 }
 0x613   :  { %v427_v10 = vpop.f32.mrf.mxu0 }
 0x614   :  { %v431_v11 = vrot.slane %v427_v10, 6 }
 0x616   :  { %v433_v12 = vadd.f32 %v431_v11, %v354_v2 }
 0x618   :  { %673 = vtanh.f32 %v433_v12 }
 0x61e   :  { %v674_v13 = vpop.eup %673 }
 0x61f   :  { %v436_v14 = vrot.slane %v674_v13, 2 }
 0x621   :  { %640 = vmatmul.msk.f32.vlgmr.msrb.gmra.mxu1 %vm81_vm2, %v436_v14 }
 0x69e   :  { %v456_v15 = vpop.f32.mrf.mxu1 }
 0x69f   :  { %v460_v16 = vrot.slane %v456_v15, 5 }
 0x6a1   :  { %v462_v17 = vadd.f32 %v460_v16, %v354_v2 }
 0x6a3   :  { %675 = vtanh.f32 %v462_v17 }
 0x6a9   :  { %v676_v18 = vpop.eup %675 }
 0x6aa   :  { %v465_v19 = vrot.slane %v676_v18, 3 }
 0x6ac   :  { %641 = vmatmul.msk.f32.vlgmr.msrb.gmra.mxu2 %vm81_vm2, %v465_v19 }
 0x72f   :  { %v485_v20 = vpop.f32.mrf.mxu2 }
 0x730   :  { %v489_v21 = vrot.slane %v485_v20, 4 }
 0x732   :  { %v491_v22 = vadd.f32 %v489_v21, %v354_v2 }
 0x734   :  { %677 = vtanh.f32 %v491_v22 }
 0x73a   :  { %v678_v23 = vpop.eup %677 }
 0x73b   :  { %v494_v24 = vrot.slane %v678_v23, 4 }
 0x73d   :  { %642 = vmatmul.msk.f32.vlgmr.msrb.gmra.mxu3 %vm81_vm2, %v494_v24 }
 0x7c0   :  { %v514_v25 = vpop.f32.mrf.mxu3 }
 0x7c1   :  { %v518_v26 = vrot.slane %v514_v25, 3 }
 0x7c3   :  { %v520_v27 = vadd.f32 %v518_v26, %v354_v2 }
 0x7c5   :  { %679 = vtanh.f32 %v520_v27 }
 0x7cb   :  { %v680_v28 = vpop.eup %679 }
 0x7cc   :  { %v523_v29 = vrot.slane %v680_v28, 5 }
 0x7ce   :  { %643 = vmatmul.msk.f32.vlgmr.msra.gmra.mxu0 %vm81_vm2, %v523_v29 }
 0x84b   :  { %v543_v30 = vpop.f32.mrf.mxu0 }
 0x84c   :  { %v547_v31 = vrot.slane %v543_v30, 2 }
 0x84e   :  { %v549_v32 = vadd.f32 %v547_v31, %v354_v2 }
 0x850   :  { %681 = vtanh.f32 %v549_v32 }
 0x856   :  { %v682_v33 = vpop.eup %681 }
 0x857   :  { %v552_v34 = vrot.slane %v682_v33, 6 }
 0x859   :  { %644 = vmatmul.msk.f32.vlgmr.msra.gmra.mxu1 %vm81_vm2, %v552_v34 }
 0x8d6   :  { %v572_v39 = vpop.f32.mrf.mxu1 }
 0x8d7   :  { %v576_v40 = vrot.slane %v572_v39, 1 }
 0x8d9   :  { %v578_v41 = vadd.f32 %v576_v40, %v354_v2 }
 0x8db   :  { %683 = vtanh.f32 %v578_v41 }
 0x8e1   :  { %v684_v42 = vpop.eup %683 }
 0x8e2   :  { %v586_v43 = vrot.slane %v684_v42, 7 }
 0x8e4   :  { %645 = vmatmul.msk.f32.vlgmr.msra.gmra.mxu2 %vm81_vm2, %v586_v43 }
 0x967   :  { %v606_v45 = vpop.f32.mrf.mxu2 }
 0x968   :  { %v607_v46 = vadd.f32 %v606_v45, %v584_v44 }
 0x96a   :  { %610 = vst.msk [vmem:[#allocation6] sm:$0x1] %vm609_vm9, %v607_v46 }
 0x96b   :  { %621 = dma.vmem_to_hbm [thread:$0]  %s617_s29, 16, %s619_s9, [#allocation5]  }
 0x96c   :  { %735 = dma.done.wait [#allocation5], 16  }
 0x96d   :  { %736 = vsyncadd [#allocation5], 4294967280 }
 0x96e   :  { %626 = vsyncpa [#allocation4], 1 }
 0x96f   :  { %627 = vsyncpa [#allocation5], 1 }

</bundles_post_ra>
